<compile_context>
chip_gen: v7x
topology: tpu7x:2x2x1
jax: 0.10.0
libtpu: 0.0.40
codegen_flags: <defaults>
</compile_context>

<pallas_src>
import math
import functools

import jax
import jax.numpy as jnp
from jax.experimental import pallas as pl
from jax.experimental.pallas import tpu as pltpu


def _mha_kernel(x_ref, wqkv_ref, bqkv_ref, wo_ref, bo_ref, o_ref, *,
                num_heads, head_dim, seq_len, batch):
    H, hd, L, N = num_heads, head_dim, seq_len, batch
    E = H * hd
    D = x_ref.shape[-1]

    # (L, N, D) -> (L*N, D): rows are (l-major, n-minor); memory-order preserving.
    xm = x_ref[...].reshape(L * N, D)

    # Single fused QKV projection. The [start:stop) feature slice and the
    # 1/sqrt(head_dim) Q scale are folded into wqkv / bqkv in the wrapper.
    qkv = (jnp.dot(xm, wqkv_ref[...], preferred_element_type=jnp.float32)
           + bqkv_ref[...])                                  # (L*N, 3E)

    q = qkv[:, 0 * E:1 * E].reshape(L, N, H, hd)
    k = qkv[:, 1 * E:2 * E].reshape(L, N, H, hd)
    v = qkv[:, 2 * E:3 * E].reshape(L, N, H, hd)

    def heads_to_batch(t):                                   # (L, N, H, hd) -> (N*H, L, hd)
        return jnp.transpose(t, (1, 2, 0, 3)).reshape(N * H, L, hd)

    qb, kb, vb = heads_to_batch(q), heads_to_batch(k), heads_to_batch(v)

    # scores: contract the last dims (no explicit transpose of K), batch = (n, h)
    s = jnp.einsum('bld,bmd->blm', qb, kb, preferred_element_type=jnp.float32)
    s = s - jnp.max(s, axis=-1, keepdims=True)
    p = jnp.exp(s)
    p = p / jnp.sum(p, axis=-1, keepdims=True)               # exact softmax

    ctx = jnp.einsum('blm,bmd->bld', p, vb,
                     preferred_element_type=jnp.float32)     # (N*H, L, hd)

    # back to (l-major, n-minor) rows with a lane-dense E = H*hd feature axis,
    # then ONE fused output projection for all heads.
    ctx = jnp.transpose(ctx.reshape(N, H, L, hd), (2, 0, 1, 3)).reshape(L * N, E)
    out = jnp.dot(ctx, wo_ref[...], preferred_element_type=jnp.float32) + bo_ref[...]

    o_ref[...] = out.reshape(L, N, E).astype(o_ref.dtype)


def sensor_mha_forward(x, params, *, num_heads, start_index, stop_index):
    """x: (L, N, D_total) -> (L, N, E) with E = stop_index - start_index."""
    E = stop_index - start_index
    assert E % num_heads == 0
    head_dim = E // num_heads
    L, N, D_total = x.shape
    scale = 1.0 / math.sqrt(head_dim)

    # --- one-time weight prep (plain JAX; PyTorch convention y = x @ W^T) ---
    W = params["in_proj_weight"]                     # (3E, E): rows [Wq; Wk; Wv]
    b = params["in_proj_bias"]                       # (3E,)

    # (E, 3E): x_sl @ w_qkv_small == [q | k | v]; fold 1/sqrt(head_dim) into Q columns.
    w_qkv_small = W.T
    w_qkv_small = w_qkv_small.at[:, :E].multiply(scale)
    # Fold the [start:stop) feature slice into the weights: zero rows outside it.
    w_qkv = jnp.zeros((D_total, 3 * E), W.dtype).at[start_index:stop_index, :].set(w_qkv_small)
    b_qkv = b.at[:E].multiply(scale).reshape(1, 3 * E)

    wo = params["out_proj_weight"].T                 # (E, E)
    bo = params["out_proj_bias"].reshape(1, E)       # (1, E)

    kern = functools.partial(_mha_kernel, num_heads=num_heads, head_dim=head_dim,
                             seq_len=L, batch=N)

    # Gridless single invocation: the whole working set (<1 MiB padded) fits in
    # VMEM on every TPU generation; full-array VMEM blocks, no pipelining needed.
    out = pl.pallas_call(
        kern,
        out_shape=jax.ShapeDtypeStruct((L, N, E), x.dtype),
        in_specs=[pl.BlockSpec(memory_space=pltpu.MemorySpace.VMEM)] * 5,
        out_specs=pl.BlockSpec(memory_space=pltpu.MemorySpace.VMEM),
    )(x, w_qkv, b_qkv, wo, bo)

    # dropout_rate=0.0 and drop_path_rate=0.0 -> both are identities.
    # TODO(synk): self.drop_path is never defined in the PyTorch __init__; treated as identity.
    return out


def _reference_mha(x, params, *, num_heads, start_index, stop_index):
    """Pure-JAX reference reproducing nn.MultiheadAttention forward (no dropout)."""
    E = stop_index - start_index
    hd = E // num_heads
    x_sl = x[:, :, start_index:stop_index]           # (L, N, E)
    L, N, _ = x_sl.shape
    W = params["in_proj_weight"]
    b = params["in_proj_bias"]
    q = x_sl @ W[:E].T + b[:E]
    k = x_sl @ W[E:2 * E].T + b[E:2 * E]
    v = x_sl @ W[2 * E:].T + b[2 * E:]

    def split(t):  # (L, N, E) -> (N*H, L, hd)
        t = t.reshape(L, N * num_heads, hd)
        return jnp.transpose(t, (1, 0, 2))

    qh, kh, vh = split(q) / math.sqrt(hd), split(k), split(v)
    s = jnp.einsum("bld,bmd->blm", qh, kh)
    p = jax.nn.softmax(s, axis=-1)
    ctx = jnp.einsum("blm,bmd->bld", p, vh)           # (N*H, L, hd)
    ctx = jnp.transpose(ctx, (1, 0, 2)).reshape(L, N, E)
    return ctx @ params["out_proj_weight"].T + params["out_proj_bias"]


if __name__ == "__main__":
    # Shapes consistent with the module's forward:
    # input (seq_len=8, batch=2, total_features=48), slice [8:40] -> projection_half=32
    L, N, D_total = 8, 2, 48
    start_index, stop_index = 8, 40
    projection_half = stop_index - start_index        # 32
    num_heads = 4

    key = jax.random.PRNGKey(0)
    kx, kw1, kb1, kw2, kb2 = jax.random.split(key, 5)

    x = jax.random.normal(kx, (L, N, D_total), dtype=jnp.float32)

    E = projection_half
    params = {
        "in_proj_weight": jax.random.normal(kw1, (3 * E, E), jnp.float32) * (1.0 / math.sqrt(E)),
        "in_proj_bias": jax.random.normal(kb1, (3 * E,), jnp.float32) * 0.01,
        "out_proj_weight": jax.random.normal(kw2, (E, E), jnp.float32) * (1.0 / math.sqrt(E)),
        "out_proj_bias": jax.random.normal(kb2, (E,), jnp.float32) * 0.01,
    }

    out = sensor_mha_forward(x, params, num_heads=num_heads,
                             start_index=start_index, stop_index=stop_index)
    out = jax.block_until_ready(out)

    ref = _reference_mha(x, params, num_heads=num_heads,
                         start_index=start_index, stop_index=stop_index)
    assert out.shape == (L, N, E), out.shape
    err = float(jnp.max(jnp.abs(out - ref)))
    assert jnp.allclose(out, ref, rtol=1e-4, atol=1e-4), err

    print("KERNEL_OK")
</pallas_src>

<mosaic_0001>
module attributes {stable_mosaic.version = 11 : i64} {
  func.func @_mha_kernel(%arg0: memref<8x2x48xf32, #tpu.memory_space<vmem>>, %arg1: memref<48x96xf32, #tpu.memory_space<vmem>>, %arg2: memref<1x96xf32, #tpu.memory_space<vmem>>, %arg3: memref<32x32xf32, #tpu.memory_space<vmem>>, %arg4: memref<1x32xf32, #tpu.memory_space<vmem>>, %arg5: memref<8x2x32xf32, #tpu.memory_space<vmem>>) attributes {dimension_semantics = [], scalar_prefetch = 0 : i64, scratch_operands = 0 : i64, tpu.core_type = #tpu.core_type<tc>} {
    %c0 = arith.constant 0 : index
    %c0_0 = arith.constant 0 : index
    %c0_1 = arith.constant 0 : index
    %0 = vector.load %arg0[%c0, %c0_0, %c0_1] : memref<8x2x48xf32, #tpu.memory_space<vmem>>, vector<8x2x48xf32>
    %1 = vector.shape_cast %0 : vector<8x2x48xf32> to vector<16x48xf32>
    %c0_2 = arith.constant 0 : index
    %c0_3 = arith.constant 0 : index
    %2 = vector.load %arg1[%c0_2, %c0_3] : memref<48x96xf32, #tpu.memory_space<vmem>>, vector<48x96xf32>
    %cst = arith.constant dense<0.000000e+00> : vector<16x96xf32>
    %3 = tpu.matmul %1, %2, %cst {dimension_numbers = #tpu.dot_dimension_numbers<[1], [0], [0], [1], [0, 0, 1, 1], [], []>} : vector<16x48xf32>, vector<48x96xf32>, vector<16x96xf32> -> vector<16x96xf32>
    %c0_4 = arith.constant 0 : index
    %c0_5 = arith.constant 0 : index
    %4 = vector.load %arg2[%c0_4, %c0_5] : memref<1x96xf32, #tpu.memory_space<vmem>>, vector<1x96xf32>
    %5 = vector.broadcast %4 : vector<1x96xf32> to vector<16x96xf32>
    %6 = arith.addf %3, %5 : vector<16x96xf32>
    %7 = vector.extract_strided_slice %6 {offsets = [0, 0], sizes = [16, 32], strides = [1, 1]} : vector<16x96xf32> to vector<16x32xf32>
    %8 = vector.shape_cast %7 : vector<16x32xf32> to vector<8x2x4x8xf32>
    %9 = vector.extract_strided_slice %6 {offsets = [0, 32], sizes = [16, 32], strides = [1, 1]} : vector<16x96xf32> to vector<16x32xf32>
    %10 = vector.shape_cast %9 : vector<16x32xf32> to vector<8x2x4x8xf32>
    %11 = vector.extract_strided_slice %6 {offsets = [0, 64], sizes = [16, 32], strides = [1, 1]} : vector<16x96xf32> to vector<16x32xf32>
    %12 = vector.shape_cast %11 : vector<16x32xf32> to vector<8x2x4x8xf32>
    %13 = tpu.transpose %8, [1, 2, 0, 3] : vector<8x2x4x8xf32> -> vector<2x4x8x8xf32>
    %14 = vector.shape_cast %13 : vector<2x4x8x8xf32> to vector<8x8x8xf32>
    %15 = tpu.transpose %10, [1, 2, 0, 3] : vector<8x2x4x8xf32> -> vector<2x4x8x8xf32>
    %16 = vector.shape_cast %15 : vector<2x4x8x8xf32> to vector<8x8x8xf32>
    %17 = tpu.transpose %12, [1, 2, 0, 3] : vector<8x2x4x8xf32> -> vector<2x4x8x8xf32>
    %18 = vector.shape_cast %17 : vector<2x4x8x8xf32> to vector<8x8x8xf32>
    "tpu.trace_start"() <{level = 10 : i32, message = "bld,bmd->blm"}> : () -> ()
    %cst_6 = arith.constant dense<0.000000e+00> : vector<8x8x8xf32>
    %19 = tpu.matmul %14, %16, %cst_6 {dimension_numbers = #tpu.dot_dimension_numbers<[2], [2], [1], [1], [0, 0, 0, 1, 1, 1], [0], [0]>} : vector<8x8x8xf32>, vector<8x8x8xf32>, vector<8x8x8xf32> -> vector<8x8x8xf32>
    "tpu.trace_stop"() : () -> ()
    %cst_7 = arith.constant dense<0xFF800000> : vector<8x8xf32>
    %20 = vector.multi_reduction <maximumf>, %19, %cst_7 [2] : vector<8x8x8xf32> to vector<8x8xf32>
    %21 = vector.shape_cast %20 : vector<8x8xf32> to vector<8x8x1xf32>
    %22 = vector.broadcast %21 : vector<8x8x1xf32> to vector<8x8x8xf32>
    %23 = arith.subf %19, %22 : vector<8x8x8xf32>
    %24 = math.exp %23 : vector<8x8x8xf32>
    %cst_8 = arith.constant dense<0.000000e+00> : vector<8x8xf32>
    %25 = vector.multi_reduction <add>, %24, %cst_8 [2] : vector<8x8x8xf32> to vector<8x8xf32>
    %26 = vector.shape_cast %25 : vector<8x8xf32> to vector<8x8x1xf32>
    %27 = vector.broadcast %26 : vector<8x8x1xf32> to vector<8x8x8xf32>
    %28 = arith.divf %24, %27 : vector<8x8x8xf32>
    "tpu.trace_start"() <{level = 10 : i32, message = "blm,bmd->bld"}> : () -> ()
    %cst_9 = arith.constant dense<0.000000e+00> : vector<8x8x8xf32>
    %29 = tpu.matmul %28, %18, %cst_9 {dimension_numbers = #tpu.dot_dimension_numbers<[2], [1], [1], [2], [0, 0, 0, 1, 1, 2], [0], [0]>} : vector<8x8x8xf32>, vector<8x8x8xf32>, vector<8x8x8xf32> -> vector<8x8x8xf32>
    "tpu.trace_stop"() : () -> ()
    %30 = vector.shape_cast %29 : vector<8x8x8xf32> to vector<2x4x8x8xf32>
    %31 = tpu.transpose %30, [2, 0, 1, 3] : vector<2x4x8x8xf32> -> vector<8x2x4x8xf32>
    %32 = vector.shape_cast %31 : vector<8x2x4x8xf32> to vector<16x32xf32>
    %c0_10 = arith.constant 0 : index
    %c0_11 = arith.constant 0 : index
    %33 = vector.load %arg3[%c0_10, %c0_11] : memref<32x32xf32, #tpu.memory_space<vmem>>, vector<32x32xf32>
    %cst_12 = arith.constant dense<0.000000e+00> : vector<16x32xf32>
    %34 = tpu.matmul %32, %33, %cst_12 {dimension_numbers = #tpu.dot_dimension_numbers<[1], [0], [0], [1], [0, 0, 1, 1], [], []>} : vector<16x32xf32>, vector<32x32xf32>, vector<16x32xf32> -> vector<16x32xf32>
    %c0_13 = arith.constant 0 : index
    %c0_14 = arith.constant 0 : index
    %35 = vector.load %arg4[%c0_13, %c0_14] : memref<1x32xf32, #tpu.memory_space<vmem>>, vector<1x32xf32>
    %36 = vector.broadcast %35 : vector<1x32xf32> to vector<16x32xf32>
    %37 = arith.addf %34, %36 : vector<16x32xf32>
    %38 = vector.shape_cast %37 : vector<16x32xf32> to vector<8x2x32xf32>
    %c0_15 = arith.constant 0 : index
    %c0_16 = arith.constant 0 : index
    %c0_17 = arith.constant 0 : index
    %39 = vector.load %arg5[%c0_15, %c0_16, %c0_17] : memref<8x2x32xf32, #tpu.memory_space<vmem>>, vector<8x2x32xf32>
    tpu.vector_store %arg5[%c0_15, %c0_16, %c0_17], %38 {strides = array<i32>} : memref<8x2x32xf32, #tpu.memory_space<vmem>>, vector<8x2x32xf32>,
    return
  }
}

</mosaic_0001>

<bundles_post_ra>
// kernel: tpu_custom_call.1
= control target key start
LH: loop header
LB: loop body
LE: loop exit
PB: predicated region body
PF: predicated region fallthrough
CT: control target
= control target key end

     0   :  { %10 = vsyncpa [#allocation3], 0  ;;  %s3686_s0 = inlined_call_operand.hbm [shape: f32[8,2,48], index: 0, kind: input, shape index: {}]   ;;  %s3687_s1 = inlined_call_operand.hbm [shape: f32[48,96], index: 1, kind: input, shape index: {}]   ;;  %s3688_s2 = inlined_call_operand.vmem [shape: f32[1,96], index: 2, kind: input, shape index: {}]   ;;  %s3689_s3 = inlined_call_operand.hbm [shape: f32[32,32], index: 3, kind: input, shape index: {}]   ;;  %s3690_s4 = inlined_call_operand.vmem [shape: f32[1,32], index: 4, kind: input, shape index: {}]   ;;  %s3691_s5 = inlined_call_operand.hbm [shape: f32[8,2,32], index: 5, kind: output, shape index: {}]  }
   0x1   :  { %11 = vsyncpa [#allocation6], 0 }
   0x2   :  { %12 = vsyncpa [#allocation4], 0  ;;  %s3197_s18 = smov [#allocation5]   ;;  %s3103_s22 = scalar_lea.hbm %s3687_s1, 768 }
   0x3   :  { %s30_s19 = sshll.u32 %s3197_s18, 4  ;;  %p3104_p0 = scmp.ne.s32.totalorder %s3687_s1, %s3103_s22  ;;  %s31_s19 = int_to_ptr.vmem [resolvable:$true] %s30_s19 }
   0x4   :  { %p3107_p1 = scmp.lt.u32.totalorder %s3103_s22, %s3687_s1 }
   0x6   :  { %p3109_p2 = pnand %p3107_p1, %p3104_p0 }
   0x8   :  { %3112 = shalt.err (!%p3109_p2)
}
   0x9   :  { %s3113_s27 = scalar_lea.vmem %s31_s19, 768  ;;  %p3118_p4 = scmp.lt.s32.totalorder %s31_s19, %s31_s19 }
   0xa   :  { %p3114_p3 = scmp.ne.s32.totalorder %s31_s19, %s3113_s27  ;;  %p3119_p5 = scmp.lt.s32.totalorder %s3113_s27, %s3113_s27 }
   0xc   :  { %p3120_p6 = por %p3119_p5, %p3118_p4 }
   0xe   :  { %p3121_p7 = pnand %p3120_p6, %p3114_p3 }
  0x10   :  { %3124 = shalt.err (!%p3121_p7)
}
  0x11   :  { %s3198_s28 = smov 128   ;;  %s3199_s29 = smov 8  }
  0x12   :  { %36 = dma.hbm_to_vmem [thread:$0]  %s3687_s1, 768, %s31_s19, [#allocation6], %s3198_s28, %s3198_s28, %s3199_s29  }
  0x13   :  { %s3200_s7 = smov [#allocation2]   ;;  %s3125_s11 = scalar_lea.hbm %s3686_s0, 256 }
  0x14   :  { %s18_s8 = sshll.u32 %s3200_s7, 4  ;;  %p3126_p8 = scmp.ne.s32.totalorder %s3686_s0, %s3125_s11  ;;  %s19_s8 = int_to_ptr.vmem [resolvable:$true] %s18_s8 }
  0x15   :  { %p3129_p9 = scmp.lt.u32.totalorder %s3125_s11, %s3686_s0 }
  0x17   :  { %p3131_p10 = pnand %p3129_p9, %p3126_p8 }
  0x19   :  { %3134 = shalt.err (!%p3131_p10)
}
  0x1a   :  { %s3135_s16 = scalar_lea.vmem %s19_s8, 256  ;;  %p3140_p12 = scmp.lt.s32.totalorder %s19_s8, %s19_s8 }
  0x1b   :  { %p3136_p11 = scmp.ne.s32.totalorder %s19_s8, %s3135_s16  ;;  %p3141_p13 = scmp.lt.s32.totalorder %s3135_s16, %s3135_s16 }
  0x1d   :  { %p3142_p0 = por %p3141_p13, %p3140_p12 }
  0x1f   :  { %p3143_p1 = pnand %p3142_p0, %p3136_p11 }
  0x21   :  { %3146 = shalt.err (!%p3143_p1)
}
  0x22   :  { %s3201_s1 = smov 32   ;;  %s3202_s17 = smov 2  }
  0x23   :  { %24 = dma.hbm_to_vmem [thread:$0]  %s3686_s0, 256, %s19_s8, [#allocation3], %s3201_s1, %s3201_s1, %s3202_s17  }
  0x24   :  { %s3203_s20 = smov [#allocation7]   ;;  %s3147_s24 = scalar_lea.hbm %s3689_s3, 512 }
  0x25   :  { %s44_s21 = sshll.u32 %s3203_s20, 4  ;;  %p3148_p2 = scmp.ne.s32.totalorder %s3689_s3, %s3147_s24  ;;  %s45_s21 = int_to_ptr.vmem [resolvable:$true] %s44_s21 }
  0x26   :  { %p3151_p3 = scmp.lt.u32.totalorder %s3147_s24, %s3689_s3 }
  0x28   :  { %p3153_p4 = pnand %p3151_p3, %p3148_p2 }
  0x2a   :  { %3156 = shalt.err (!%p3153_p4)
}
  0x2b   :  { %s3157_s6 = scalar_lea.vmem %s45_s21, 512  ;;  %p3162_p6 = scmp.lt.s32.totalorder %s45_s21, %s45_s21 }
  0x2c   :  { %p3158_p5 = scmp.ne.s32.totalorder %s45_s21, %s3157_s6  ;;  %p3163_p7 = scmp.lt.s32.totalorder %s3157_s6, %s3157_s6 }
  0x2e   :  { %p3164_p8 = por %p3163_p7, %p3162_p6 }
  0x30   :  { %p3165_p9 = pnand %p3164_p8, %p3158_p5 }
  0x32   :  { %3168 = shalt.err (!%p3165_p9)
}
  0x33   :  { %50 = dma.hbm_to_vmem [thread:$0]  %s3689_s3, 512, %s45_s21, [#allocation6], %s3198_s28, %s3198_s28, %s3199_s29  }
  0x34   :  { %3191 = dma.done.wait [#allocation3], 256  }
  0x35   :  { %3192 = vsyncadd [#allocation3], 4294967040 }
  0x36   :  { %3193 = dma.done.wait [#allocation6], 1280  }
  0x37   :  { %3194 = vsyncadd [#allocation6], 4294966016  ;;  %v96_v0 = vlaneseq  ;;  %v3204_v1 = vmov 1983009808   ;;  %v70_v5 = vld [vmem:[#allocation5] sm:$0xff]  ;;  %v71_v6 = vld [vmem:[#allocation5 + $0x8] sm:$0xff] }
  0x38   :  { %v94_v2 = vunpack.c.l.s4 %v3204_v1  ;;  %v72_v7 = vld [vmem:[#allocation5 + $0x10] sm:$0xff]  ;;  %v3032_v8 = vpack.c.bf16 %v71_v6, %v70_v5  ;;  %v73_v9 = vld [vmem:[#allocation5 + $0x18] sm:$0xff]  ;;  %v74_v10 = vld [vmem:[#allocation5 + $0x20] sm:$0xff]  ;;  %vm125_vm0 = vcmask 392192   ;;  %s3205_s8 = smov 112   ;;  %s3206_s9 = smov 120  }
  0x39   :  { %v3291_v4 = vshrl.u32 %v96_v0, 7  ;;  %v75_v11 = vld [vmem:[#allocation5 + $0x28] sm:$0xff]  ;;  %v3036_v13 = vpack.c.bf16 %v73_v9, %v72_v7  ;;  %v62_v14 = vld [vmem:[#allocation2] sm:$0x3]  ;;  %v63_v15 = vld [vmem:[#allocation2 + $0x2] sm:$0x3] }
  0x3a   :  { %v95_v3 = vunpack.c.0.s8 %v94_v2  ;;  %v64_v16 = vld [vmem:[#allocation2 + $0x4] sm:$0x3]  ;;  %3033 = vmatprep.subr.bf16.mxu0 %v3032_v8  ;;  %v65_v17 = vld [vmem:[#allocation2 + $0x6] sm:$0x3]  ;;  %v91_v18 = vcombine.low %v62_v14, %v63_v15  ;;  %v66_v19 = vld [vmem:[#allocation2 + $0x8] sm:$0x3]  ;;  %v3040_v25 = vpack.c.bf16 %v75_v11, %v74_v10 }
  0x3b   :  { %v67_v20 = vld [vmem:[#allocation2 + $0xa] sm:$0x3]  ;;  %3035 = vmatpush3.bf16.msra.mxu0 %v3032_v8  ;;  %v92_v21 = vcombine.low %v64_v16, %v65_v17  ;;  %v68_v22 = vld [vmem:[#allocation2 + $0xc] sm:$0x3]  ;;  %v69_v23 = vld [vmem:[#allocation2 + $0xe] sm:$0x3] }
  0x3c   :  { %v3294_v12 = vsub.s32 %v95_v3, %v3291_v4  ;;  %v108_v24 = vcombine.low %v66_v19, %v67_v20  ;;  %3037 = vmatprep.subr.bf16.mxu0 %v3036_v13  ;;  %v109_v27 = vcombine.low %v68_v22, %v69_v23  ;;  %v2838_v33 = vld [vmem:[%s3688_s2] ss:$0 sm:$0xff]  ;;  %s3207_s10 = smov 104   ;;  %s3208_s2 = smov 96   ;;  %v3209_v44 = vmov 0.0  }
  0x3d   :  { %2941 = vmatprep.subr.mxu1 %v3209_v44  ;;  %vm3210_vm1 = vmmov 0   ;;  %v3211_v45 = vmov 1934713408   ;;  %vm1089_vm2 = vcmask 64512   ;;  %s3212_s11 = smov 64   ;;  %s3213_s12 = smov 24  }
  0x3e   :  { %v99_v26 = vrot.slane %v91_v18, %v3294_v12  ;;  %v106_v28 = vrot.slane %v92_v21, %v3294_v12  ;;  %v116_v29 = vrot.slane %v108_v24, %v3294_v12  ;;  %v123_v30 = vrot.slane %v109_v27, %v3294_v12  ;;  %2943 = vmatprep.mubr.msk.f32.mxu1 %vm3210_vm1, %v3209_v44  ;;  %s3214_s13 = smov 16   ;;  %s3215_s15 = smov [#allocation8]  }
  0x3f   :  { %3039 = vmatpush3.bf16.msra.mxu0 %v3036_v13  ;;  %v260_v46 = vunpack.c.l.s4 %v3211_v45  ;;  %vm2668_vm3 = vcmask 130048   ;;  %vm2671_vm4 = vcmask 195584   ;;  %vm2685_vm5 = vcmask 261120   ;;  %s2825_s16 = sshll.u32 %s3215_s15, 4  ;;  %s2826_s16 = int_to_ptr.vmem [resolvable:$true] %s2825_s16 }
  0x40   :  { %v107_v31 = vcombine.low %v99_v26, %v106_v28  ;;  %3041 = vmatprep.subr.bf16.mxu0 %v3040_v25  ;;  %v124_v32 = vcombine.low %v116_v29, %v123_v30  ;;  %vm2811_vm6 = vcmask 254976   ;;  %p3174_p11 = scmp.lt.s32.totalorder %s2826_s16, %s2826_s16 }
  0x41   :  { %v261_v55 = vunpack.c.0.s8 %v260_v46 }
  0x42   :  { %2938 = vmatprep.mubr.msk.f32.mxu0 %vm125_vm0, %v107_v31 }
  0x43   :  { %3043 = vmatpush3.bf16.msra.mxu0 %v3040_v25  ;;  %v3364_v1 = vsub.s32 %v261_v55, %v3291_v4 }
  0x44   :  { %2956 = vmatprep.subr.mxu0 %v3209_v44 }
  0x46   :  { %2939 = vmatmul.mubr.msk.f32.vlgmr.msra.gmra.mrb[0].mxu0 %vm125_vm0, %v124_v32 }
  0x47   :  { %2958 = vmatprep.mubr.msk.f32.mxu0 %vm3210_vm1, %v3209_v44 }
 0x119   :  { %v2940_v34 = vpop.f32.mrb[0].mxu0 }
 0x11a   :  { %v3303_v35 = vadd.f32 %v2940_v34, %v2838_v33  ;;  %v196_v36 = vpop.f32.mrb[1].mxu0 }
 0x11b   :  { %v3307_v37 = vadd.f32 %v2838_v33, %v196_v36 }
 0x11c   :  { %215 = vrot.lane.b32.xlu1 %v3303_v35, %s3205_s8  ;;  %209 = vrot.lane.b32.xlu0 %v3303_v35, %s3206_s9 }
 0x120   :  { %213 = vrot.lane.b32.xlu1 %v3307_v37, %s3205_s8  ;;  %207 = vrot.lane.b32.xlu0 %v3307_v37, %s3206_s9 }
 0x124   :  { %221 = vrot.lane.b32.xlu1 %v3303_v35, %s3207_s10  ;;  %219 = vrot.lane.b32.xlu0 %v3307_v37, %s3207_s10 }
 0x128   :  { %363 = vrot.lane.b32.xlu1 %v3303_v35, %s3208_s2  ;;  %361 = vrot.lane.b32.xlu0 %v3307_v37, %s3208_s2 }
 0x18e   :  { %v3315_v38 = vpop.permute.xlu1 %215  ;;  %v3317_v39 = vpop.permute.xlu0 %209 }
 0x18f   :  { %367 = vrot.lane.b32.xlu1 %v3317_v39, %s3208_s2  ;;  %v293_v51 = vcombine.low %v3303_v35, %v3315_v38  ;;  %v294_v52 = vcombine.high %v3303_v35, %v3315_v38 }
 0x191   :  { %v301_v61 = vrot.slane %v293_v51, %v3294_v12  ;;  %v308_v62 = vrot.slane %v294_v52, %v3294_v12 }
 0x192   :  { %v3320_v40 = vpop.permute.xlu1 %213  ;;  %v3322_v41 = vpop.permute.xlu0 %207 }
 0x193   :  { %371 = vrot.lane.b32.xlu1 %v3315_v38, %s3208_s2  ;;  %365 = vrot.lane.b32.xlu0 %v3322_v41, %s3208_s2  ;;  %v225_v53 = vcombine.low %v3307_v37, %v3320_v40  ;;  %v226_v54 = vcombine.high %v3307_v37, %v3320_v40 }
 0x195   :  { %v233_v63 = vrot.slane %v225_v53, %v3294_v12  ;;  %v240_v0 = vrot.slane %v226_v54, %v3294_v12 }
 0x196   :  { %v3326_v42 = vpop.permute.xlu1 %221  ;;  %v3330_v43 = vpop.permute.xlu0 %219 }
 0x197   :  { %375 = vrot.lane.b32.xlu1 %v3326_v42, %s3208_s2  ;;  %369 = vrot.lane.b32.xlu0 %v3320_v40, %s3208_s2  ;;  %v309_v47 = vcombine.low %v3317_v39, %v3326_v42  ;;  %v310_v48 = vcombine.high %v3317_v39, %v3326_v42  ;;  %v241_v49 = vcombine.low %v3322_v41, %v3330_v43 }
 0x198   :  { %v242_v50 = vcombine.high %v3322_v41, %v3330_v43 }
 0x199   :  { %v317_v57 = vrot.slane %v309_v47, %v3294_v12  ;;  %v324_v58 = vrot.slane %v310_v48, %v3294_v12  ;;  %v249_v59 = vrot.slane %v241_v49, %v3294_v12 }
 0x19a   :  { %v364_v56 = vpop.permute.xlu1 %363  ;;  %v256_v60 = vrot.slane %v242_v50, %v3294_v12  ;;  %v362_v2 = vpop.permute.xlu0 %361 }
 0x19b   :  { %373 = vrot.lane.b32.xlu0 %v3330_v43, %s3208_s2  ;;  %v325_v5 = vcombine.low %v301_v61, %v317_v57  ;;  %v326_v6 = vcombine.high %v301_v61, %v317_v57  ;;  %v341_v7 = vcombine.low %v308_v62, %v324_v58  ;;  %v342_v8 = vcombine.high %v308_v62, %v324_v58 }
 0x19c   :  { %v257_v9 = vcombine.low %v233_v63, %v249_v59  ;;  %v258_v10 = vcombine.high %v233_v63, %v249_v59  ;;  %v273_v11 = vcombine.low %v240_v0, %v256_v60  ;;  %v274_v13 = vcombine.high %v240_v0, %v256_v60 }
 0x19d   :  { %v3367_v16 = vrot.slane %v325_v5, %v3364_v1  ;;  %v3370_v17 = vrot.slane %v326_v6, %v3364_v1  ;;  %v349_v4 = vrot.slane %v341_v7, %v3364_v1  ;;  %v356_v18 = vrot.slane %v342_v8, %v3364_v1 }
 0x19e   :  { %v265_v19 = vrot.slane %v257_v9, %v3364_v1  ;;  %v272_v20 = vrot.slane %v258_v10, %v3364_v1  ;;  %v281_v21 = vrot.slane %v273_v11, %v3364_v1  ;;  %v288_v22 = vrot.slane %v274_v13, %v3364_v1 }
 0x19f   :  { %v697_v26 = vcombine.low %v3367_v16, %v349_v4  ;;  %v705_v27 = vcombine.low %v3370_v17, %v356_v18  ;;  %v2843_v31 = vcombine.high %v3367_v16, %v349_v4  ;;  %v2844_v32 = vcombine.high %v3370_v17, %v356_v18 }
 0x1a0   :  { %v681_v33 = vcombine.low %v265_v19, %v281_v21  ;;  %v689_v34 = vcombine.low %v272_v20, %v288_v22  ;;  %v2841_v48 = vcombine.high %v265_v19, %v281_v21  ;;  %v2842_v49 = vcombine.high %v272_v20, %v288_v22 }
 0x1a1   :  { %v3387_v57 = vrot.slane %v2843_v31, %v3294_v12  ;;  %v3390_v58 = vrot.slane %v2844_v32, %v3294_v12 }
 0x1a2   :  { %v3401_v7 = vrot.slane %v2841_v48, %v3294_v12  ;;  %v3404_v8 = vrot.slane %v2842_v49, %v3294_v12 }
 0x201   :  { %v368_v3 = vpop.permute.xlu1 %367 }
 0x205   :  { %v372_v14 = vpop.permute.xlu1 %371  ;;  %v366_v15 = vpop.permute.xlu0 %365 }
 0x206   :  { %v453_v23 = vcombine.low %v364_v56, %v372_v14  ;;  %v454_v24 = vcombine.high %v364_v56, %v372_v14 }
 0x208   :  { %v461_v36 = vrot.slane %v453_v23, %v3294_v12  ;;  %v468_v45 = vrot.slane %v454_v24, %v3294_v12  ;;  %v688_v23 = vrot.slane %v681_v33, %v3294_v12  ;;  %v696_v24 = vrot.slane %v689_v34, %v3294_v12 }
 0x209   :  { %v376_v25 = vpop.permute.xlu1 %375  ;;  %v370_v30 = vpop.permute.xlu0 %369 }
 0x20a   :  { %v469_v28 = vcombine.low %v368_v3, %v376_v25  ;;  %v470_v29 = vcombine.high %v368_v3, %v376_v25  ;;  %v385_v50 = vcombine.low %v362_v2, %v370_v30  ;;  %v386_v51 = vcombine.high %v362_v2, %v370_v30 }
 0x20b   :  { %v704_v25 = vrot.slane %v697_v26, %v3294_v12  ;;  %v713_v49 = vcombine.low %v688_v23, %v696_v24 }
 0x20c   :  { %v477_v46 = vrot.slane %v469_v28, %v3294_v12  ;;  %v484_v47 = vrot.slane %v470_v29, %v3294_v12  ;;  %v393_v2 = vrot.slane %v385_v50, %v3294_v12  ;;  %v400_v3 = vrot.slane %v386_v51, %v3294_v12 }
 0x20d   :  { %v374_v56 = vpop.permute.xlu0 %373  ;;  %v712_v28 = vrot.slane %v705_v27, %v3294_v12  ;;  %v714_v27 = vcombine.high %v688_v23, %v696_v24 }
 0x20e   :  { %v485_v52 = vcombine.low %v461_v36, %v477_v46  ;;  %v486_v53 = vcombine.high %v461_v36, %v477_v46  ;;  %v501_v54 = vcombine.low %v468_v45, %v484_v47  ;;  %v502_v55 = vcombine.high %v468_v45, %v484_v47 }
 0x20f   :  { %v401_v59 = vcombine.low %v366_v15, %v374_v56  ;;  %v402_v60 = vcombine.high %v366_v15, %v374_v56  ;;  %v729_v50 = vcombine.low %v704_v25, %v712_v28  ;;  %v730_v51 = vcombine.high %v704_v25, %v712_v28 }
 0x210   :  { %v493_v61 = vrot.slane %v485_v52, %v3364_v1  ;;  %v500_v62 = vrot.slane %v486_v53, %v3364_v1  ;;  %v509_v63 = vrot.slane %v501_v54, %v3364_v1  ;;  %v516_v0 = vrot.slane %v502_v55, %v3364_v1 }
 0x211   :  { %v409_v5 = vrot.slane %v401_v59, %v3294_v12  ;;  %v416_v6 = vrot.slane %v402_v60, %v3294_v12  ;;  %v781_v56 = vcombine.low %v3401_v7, %v3404_v8  ;;  %v797_v59 = vcombine.low %v3387_v57, %v3390_v58 }
 0x212   :  { %v833_v9 = vcombine.low %v493_v61, %v509_v63  ;;  %v841_v10 = vcombine.low %v500_v62, %v516_v0  ;;  %v2847_v16 = vcombine.high %v493_v61, %v509_v63  ;;  %v2848_v17 = vcombine.high %v500_v62, %v516_v0 }
 0x213   :  { %v417_v11 = vcombine.low %v393_v2, %v409_v5  ;;  %v418_v13 = vcombine.high %v393_v2, %v409_v5  ;;  %v433_v14 = vcombine.low %v400_v3, %v416_v6  ;;  %v434_v15 = vcombine.high %v400_v3, %v416_v6 }
 0x214   :  { %v840_v4 = vrot.slane %v833_v9, %v3294_v12  ;;  %v848_v18 = vrot.slane %v841_v10, %v3294_v12  ;;  %v908_v36 = vrot.slane %v2847_v16, %v3294_v12  ;;  %v916_v45 = vrot.slane %v2848_v17, %v3294_v12 }
 0x215   :  { %v425_v19 = vrot.slane %v417_v11, %v3364_v1  ;;  %v432_v20 = vrot.slane %v418_v13, %v3364_v1  ;;  %v441_v21 = vrot.slane %v433_v14, %v3364_v1  ;;  %v448_v22 = vrot.slane %v434_v15, %v3364_v1 }
 0x216   :  { %v865_v46 = vcombine.low %v840_v4, %v848_v18  ;;  %v866_v47 = vcombine.high %v840_v4, %v848_v18  ;;  %v933_v55 = vcombine.low %v908_v36, %v916_v45  ;;  %v721_v0 = vrot.slane %v713_v49, %v3364_v1 }
 0x217   :  { %v817_v29 = vcombine.low %v425_v19, %v441_v21  ;;  %v825_v30 = vcombine.low %v432_v20, %v448_v22  ;;  %v2845_v31 = vcombine.high %v425_v19, %v441_v21  ;;  %v2846_v32 = vcombine.high %v432_v20, %v448_v22 }
 0x218   :  { %v873_v61 = vrot.slane %v865_v46, %v3364_v1  ;;  %v880_v63 = vrot.slane %v866_v47, %v3364_v1  ;;  %v737_v2 = vrot.slane %v729_v50, %v3364_v1  ;;  %v728_v3 = vrot.slane %v714_v27, %v3364_v1 }
 0x219   :  { %v892_v48 = vrot.slane %v2845_v31, %v3294_v12  ;;  %v900_v33 = vrot.slane %v2846_v32, %v3294_v12  ;;  %v824_v34 = vrot.slane %v817_v29, %v3294_v12  ;;  %v832_v26 = vrot.slane %v825_v30, %v3294_v12 }
 0x21a   :  { %v744_v5 = vrot.slane %v730_v51, %v3364_v1  ;;  %v782_v13 = vcombine.high %v3401_v7, %v3404_v8  ;;  %v798_v14 = vcombine.high %v3387_v57, %v3390_v58  ;;  %v934_v15 = vcombine.high %v908_v36, %v916_v45 }
 0x21b   :  { %v917_v52 = vcombine.low %v892_v48, %v900_v33  ;;  %v849_v53 = vcombine.low %v824_v34, %v832_v26  ;;  %v850_v54 = vcombine.high %v824_v34, %v832_v26  ;;  %v918_v6 = vcombine.high %v892_v48, %v900_v33 }
 0x21c   :  { %v941_v16 = vrot.slane %v933_v55, %v3364_v1  ;;  %v789_v17 = vrot.slane %v781_v56, %v3364_v1  ;;  %v745_v4 = vcombine.low %v721_v0, %v737_v2  ;;  %v748_v18 = vcombine.high %v728_v3, %v744_v5 }
 0x21d   :  { %v857_v60 = vrot.slane %v849_v53, %v3364_v1  ;;  %v864_v62 = vrot.slane %v850_v54, %v3364_v1  ;;  %v925_v11 = vrot.slane %v917_v52, %v3364_v1  ;;  %v805_v7 = vrot.slane %v797_v59, %v3364_v1 }
 0x21e   :  { %v932_v57 = vrot.slane %v918_v6, %v3364_v1  ;;  %v948_v58 = vrot.slane %v934_v15, %v3364_v1  ;;  %v796_v20 = vrot.slane %v782_v13, %v3364_v1  ;;  %v746_v21 = vcombine.high %v721_v0, %v737_v2 }
 0x21f   :  { %v881_v9 = vcombine.low %v857_v60, %v873_v61  ;;  %v884_v10 = vcombine.high %v864_v62, %v880_v63  ;;  %v882_v8 = vcombine.high %v857_v60, %v873_v61  ;;  %v950_v19 = vcombine.high %v925_v11, %v941_v16 }
 0x220   :  { %v814_v22 = vcombine.high %v789_v17, %v805_v7  ;;  %v812_v23 = vrot.slane %v798_v14, %v3364_v1  ;;  %v883_v24 = vcombine.low %v864_v62, %v880_v63  ;;  %v952_v25 = vcombine.high %v932_v57, %v948_v58 }
 0x221   :  { %2942 = vmatpush3.xpose.msk.msra.mxu1 %vm1089_vm2, %v881_v9  ;;  %2957 = vmatpush3.xpose.msk.msra.mxu0 %vm1089_vm2, %v884_v10  ;;  %v747_v28 = vcombine.low %v728_v3, %v744_v5  ;;  %v949_v30 = vcombine.low %v925_v11, %v941_v16  ;;  %v813_v31 = vcombine.low %v789_v17, %v805_v7 }
 0x222   :  { %2946 = vmatprep.subr.mxu1 %v3209_v44  ;;  %2966 = vmatprep.subr.mxu0 %v3209_v44  ;;  %v816_v29 = vcombine.high %v796_v20, %v812_v23  ;;  %v951_v32 = vcombine.low %v932_v57, %v948_v58  ;;  %v815_v36 = vcombine.low %v796_v20, %v812_v23 }
 0x224   :  { %2944 = vmatmul.mubr.msk.f32.vlgmr.msra.gmra.mrb[0].mxu1 %vm1089_vm2, %v745_v4  ;;  %2959 = vmatmul.mubr.msk.f32.vlgmr.msra.gmra.mrb[2].mxu0 %vm1089_vm2, %v748_v18 }
 0x225   :  { %2947 = vmatpush3.xpose.msk.msra.mxu1 %vm1089_vm2, %v882_v8  ;;  %2967 = vmatpush3.xpose.msk.msra.mxu0 %vm1089_vm2, %v950_v19 }
 0x226   :  { %2948 = vmatprep.mubr.msk.f32.mxu1 %vm3210_vm1, %v3209_v44  ;;  %2968 = vmatprep.mubr.msk.f32.mxu0 %vm3210_vm1, %v3209_v44 }
 0x227   :  { %2951 = vmatprep.subr.mxu1 %v3209_v44  ;;  %2976 = vmatprep.subr.mxu0 %v3209_v44 }
 0x228   :  { %2949 = vmatmul.mubr.msk.f32.vlgmr.msra.gmra.mrb[2].mxu1 %vm1089_vm2, %v746_v21  ;;  %2969 = vmatmul.mubr.msk.f32.vlgmr.msra.gmra.mrb[4].mxu0 %vm1089_vm2, %v814_v22 }
 0x229   :  { %2952 = vmatpush3.xpose.msk.msra.mxu1 %vm1089_vm2, %v883_v24  ;;  %2977 = vmatpush3.xpose.msk.msra.mxu0 %vm1089_vm2, %v952_v25 }
 0x22a   :  { %2953 = vmatprep.mubr.msk.f32.mxu1 %vm3210_vm1, %v3209_v44  ;;  %2978 = vmatprep.mubr.msk.f32.mxu0 %vm3210_vm1, %v3209_v44 }
 0x22b   :  { %2961 = vmatprep.subr.mxu1 %v3209_v44  ;;  %2986 = vmatprep.subr.mxu0 %v3209_v44 }
 0x22c   :  { %2954 = vmatmul.mubr.msk.f32.vlgmr.msra.gmra.mrb[4].mxu1 %vm1089_vm2, %v747_v28  ;;  %2979 = vmatmul.mubr.msk.f32.vlgmr.msra.gmra.mrb[6].mxu0 %vm1089_vm2, %v816_v29 }
 0x22d   :  { %2962 = vmatpush3.xpose.msk.msra.mxu1 %vm1089_vm2, %v949_v30  ;;  %2963 = vmatprep.mubr.msk.f32.mxu1 %vm3210_vm1, %v3209_v44 }
 0x22e   :  { %2971 = vmatprep.subr.mxu1 %v3209_v44  ;;  %2988 = vmatprep.mubr.msk.f32.mxu0 %vm3210_vm1, %v3209_v44 }
 0x230   :  { %2964 = vmatmul.mubr.msk.f32.vlgmr.msra.gmra.mrb[6].mxu1 %vm1089_vm2, %v813_v31 }
 0x231   :  { %2972 = vmatpush3.xpose.msk.msra.mxu1 %vm1089_vm2, %v951_v32  ;;  %2973 = vmatprep.mubr.msk.f32.mxu1 %vm3210_vm1, %v3209_v44 }
 0x232   :  { %2981 = vmatprep.subr.mxu1 %v3209_v44 }
 0x234   :  { %2974 = vmatmul.mubr.msk.f32.vlgmr.msra.gmra.mrb[8].mxu1 %vm1089_vm2, %v815_v36 }
 0x235   :  { %2983 = vmatprep.mubr.msk.f32.mxu1 %vm3210_vm1, %v3209_v44 }
 0x2f7   :  { %v1162_v45 = vpop.f32.mrb[0].mxu1  ;;  %v1390_v46 = vpop.f32.mrb[2].mxu0 }
 0x2f8   :  { %v2945_v47 = vpop.f32.mrb[1].mxu1  ;;  %v2960_v48 = vpop.f32.mrb[3].mxu0  ;;  %v1698_v33 = vsel %vm1089_vm2, %v1162_v45, -inf  ;;  %v1707_v50 = vsel %vm1089_vm2, %v1390_v46, -inf }
 0x2f9   :  { %1699 = vmax.xlane.f32.xlu0 %v1698_v33 }
 0x2fb   :  { %v1238_v34 = vpop.f32.mrb[2].mxu1  ;;  %v1542_v26 = vpop.f32.mrb[4].mxu0 }
 0x2fc   :  { %v2950_v49 = vpop.f32.mrb[3].mxu1  ;;  %v2970_v27 = vpop.f32.mrb[5].mxu0  ;;  %v1701_v51 = vsel %vm1089_vm2, %v1238_v34, -inf  ;;  %v1713_v61 = vsel %vm1089_vm2, %v1542_v26, -inf }
 0x2fd   :  { %1708 = vmax.xlane.f32.xlu0 %v1707_v50  ;;  %1702 = vmax.xlane.f32.xlu1 %v1701_v51 }
 0x2ff   :  { %v1314_v52 = vpop.f32.mrb[4].mxu1  ;;  %v3489_v53 = vpop.f32.mrb[6].mxu0 }
 0x300   :  { %v2955_v54 = vpop.f32.mrb[5].mxu1  ;;  %v2980_v55 = vpop.f32.mrb[7].mxu0  ;;  %v1704_v56 = vsel %vm1089_vm2, %v1314_v52, -inf  ;;  %v1719_v2 = vsel %vm1089_vm2, %v3489_v53, -inf }
 0x301   :  { %1705 = vmax.xlane.f32.xlu0 %v1704_v56 }
 0x303   :  { %v1466_v59 = vpop.f32.mrb[6].mxu1 }
 0x304   :  { %v2965_v60 = vpop.f32.mrb[7].mxu1  ;;  %v1710_v62 = vsel %vm1089_vm2, %v1466_v59, -inf }
 0x305   :  { %1714 = vmax.xlane.f32.xlu0 %v1713_v61  ;;  %1711 = vmax.xlane.f32.xlu1 %v1710_v62 }
 0x307   :  { %v1618_v63 = vpop.f32.mrb[8].mxu1 }
 0x308   :  { %v2975_v0 = vpop.f32.mrb[9].mxu1  ;;  %v1716_v3 = vsel %vm1089_vm2, %v1618_v63, -inf }
 0x309   :  { %1720 = vmax.xlane.f32.xlu0 %v1719_v2  ;;  %1717 = vmax.xlane.f32.xlu1 %v1716_v3 }
 0x31a   :  { %521 = vrot.lane.b32.xlu1 %v3307_v37, %s3212_s11 }
 0x31e   :  { %525 = vrot.lane.b32.xlu1 %v3322_v41, %s3212_s11 }
 0x31f   :  { %523 = vrot.lane.b32.xlu0 %v3303_v35, %s3212_s11 }
 0x322   :  { %527 = vrot.lane.b32.xlu1 %v3317_v39, %s3212_s11 }
 0x323   :  { %529 = vrot.lane.b32.xlu0 %v3320_v40, %s3212_s11 }
 0x326   :  { %531 = vrot.lane.b32.xlu1 %v3315_v38, %s3212_s11 }
 0x327   :  { %533 = vrot.lane.b32.xlu0 %v3330_v43, %s3212_s11 }
 0x32a   :  { %535 = vrot.lane.b32.xlu1 %v3326_v42, %s3212_s11 }
 0x386   :  { %v1700_v5 = vpop.xlane.xlu0 %1699 }
 0x387   :  { %v1722_v6 = vsub.f32 %v1162_v45, %v1700_v5 }
 0x389   :  { %v1730_v9 = vmul.f32 1.442695, %v1722_v6 }
 0x38a   :  { %v1709_v10 = vpop.xlane.xlu0 %1708  ;;  %v1703_v11 = vpop.xlane.xlu1 %1702 }
 0x38b   :  { %3071 = vpow2.f32 %v1730_v9  ;;  %v1725_v37 = vsub.f32 %v1390_v46, %v1709_v10  ;;  %v1723_v41 = vsub.f32 %v1238_v34, %v1703_v11 }
 0x38d   :  { %v1736_v13 = vmul.f32 1.442695, %v1725_v37  ;;  %v1732_v35 = vmul.f32 1.442695, %v1723_v41 }
 0x38e   :  { %v1706_v14 = vpop.xlane.xlu0 %1705 }
 0x38f   :  { %3073 = vpow2.f32 %v1736_v13  ;;  %v1724_v39 = vsub.f32 %v1314_v52, %v1706_v14 }
 0x390   :  { %3075 = vpow2.f32 %v1732_v35 }
 0x391   :  { %v1734_v40 = vmul.f32 1.442695, %v1724_v39 }
 0x392   :  { %v1715_v38 = vpop.xlane.xlu0 %1714  ;;  %v1712_v15 = vpop.xlane.xlu1 %1711 }
 0x393   :  { %3077 = vpow2.f32 %v1734_v40  ;;  %v1727_v43 = vsub.f32 %v1542_v26, %v1715_v38  ;;  %v1726_v42 = vsub.f32 %v1466_v59, %v1712_v15 }
 0x395   :  { %v3505_v16 = vpop.eup %3071  ;;  %v1740_v17 = vmul.f32 1.442695, %v1727_v43  ;;  %v1738_v4 = vmul.f32 1.442695, %v1726_v42 }
 0x396   :  { %v1721_v18 = vpop.xlane.xlu0 %1720  ;;  %v1718_v7 = vpop.xlane.xlu1 %1717  ;;  %v1746_v8 = vsel %vm1089_vm2, %v3505_v16, 0.0 }
 0x397   :  { %3079 = vpow2.f32 %v1740_v17  ;;  %v1729_v19 = vsub.f32 %v3489_v53, %v1721_v18  ;;  %v1728_v57 = vsub.f32 %v1618_v63, %v1718_v7  ;;  %1747 = vadd.xlane.f32.xlu1 %v1746_v8 }
 0x398   :  { %3081 = vpow2.f32 %v1738_v4 }
 0x399   :  { %v3510_v58 = vpop.eup %3073  ;;  %v1742_v20 = vmul.f32 1.442695, %v1728_v57  ;;  %v1744_v25 = vmul.f32 1.442695, %v1729_v19 }
 0x39a   :  { %v524_v21 = vpop.permute.xlu0 %523  ;;  %v522_v22 = vpop.permute.xlu1 %521  ;;  %v1755_v23 = vsel %vm1089_vm2, %v3510_v58, 0.0 }
 0x39b   :  { %v3514_v24 = vpop.eup %3075  ;;  %1756 = vadd.xlane.f32.xlu0 %v1755_v23  ;;  %3083 = vpow2.f32 %v1742_v20 }
 0x39c   :  { %v1749_v31 = vsel %vm1089_vm2, %v3514_v24, 0.0  ;;  %3085 = vpow2.f32 %v1744_v25 }
 0x39d   :  { %v3516_v28 = vpop.eup %3077 }
 0x39e   :  { %v530_v29 = vpop.permute.xlu0 %529  ;;  %v526_v30 = vpop.permute.xlu1 %525  ;;  %v1752_v32 = vsel %vm1089_vm2, %v3516_v28, 0.0 }
 0x39f   :  { %1750 = vadd.xlane.f32.xlu0 %v1749_v31  ;;  %1753 = vadd.xlane.f32.xlu1 %v1752_v32  ;;  %v545_v45 = vcombine.low %v522_v22, %v530_v29  ;;  %v546_v46 = vcombine.high %v522_v22, %v530_v29 }
 0x3a1   :  { %v3522_v36 = vpop.eup %3079  ;;  %v553_v50 = vrot.slane %v545_v45, %v3294_v12  ;;  %v560_v51 = vrot.slane %v546_v46, %v3294_v12 }
 0x3a2   :  { %v3524_v47 = vpop.eup %3081  ;;  %v534_v48 = vpop.permute.xlu0 %533  ;;  %v1761_v34 = vsel %vm1089_vm2, %v3522_v36, 0.0 }
 0x3a3   :  { %v528_v33 = vpop.permute.xlu1 %527  ;;  %v561_v26 = vcombine.low %v526_v30, %v534_v48  ;;  %v562_v49 = vcombine.high %v526_v30, %v534_v48  ;;  %v1758_v27 = vsel %vm1089_vm2, %v3524_v47, 0.0  ;;  %1762 = vadd.xlane.f32.xlu1 %v1761_v34 }
 0x3a4   :  { %1759 = vadd.xlane.f32.xlu0 %v1758_v27 }
 0x3a5   :  { %v569_v52 = vrot.slane %v561_v26, %v3294_v12  ;;  %v576_v53 = vrot.slane %v562_v49, %v3294_v12  ;;  %v3534_v54 = vpop.eup %3083 }
 0x3a6   :  { %v1764_v62 = vsel %vm1089_vm2, %v3534_v54, 0.0  ;;  %v3538_v63 = vpop.eup %3085 }
 0x3a7   :  { %v532_v55 = vpop.permute.xlu1 %531  ;;  %v577_v56 = vcombine.low %v553_v50, %v569_v52  ;;  %v578_v59 = vcombine.high %v553_v50, %v569_v52  ;;  %v593_v60 = vcombine.low %v560_v51, %v576_v53  ;;  %v594_v61 = vcombine.high %v560_v51, %v576_v53 }
 0x3a8   :  { %1765 = vadd.xlane.f32.xlu0 %v1764_v62  ;;  %v613_v6 = vcombine.low %v524_v21, %v532_v55  ;;  %v614_v9 = vcombine.high %v524_v21, %v532_v55  ;;  %v1767_v39 = vsel %vm1089_vm2, %v3538_v63, 0.0 }
 0x3a9   :  { %v585_v0 = vrot.slane %v577_v56, %v3364_v1  ;;  %v592_v2 = vrot.slane %v578_v59, %v3364_v1  ;;  %v601_v3 = vrot.slane %v593_v60, %v3364_v1  ;;  %v608_v5 = vrot.slane %v594_v61, %v3364_v1 }
 0x3aa   :  { %v621_v42 = vrot.slane %v613_v6, %v3294_v12  ;;  %v628_v17 = vrot.slane %v614_v9, %v3294_v12 }
 0x3ab   :  { %v536_v10 = vpop.permute.xlu1 %535  ;;  %v953_v11 = vcombine.low %v585_v0, %v601_v3  ;;  %v961_v37 = vcombine.low %v592_v2, %v608_v5  ;;  %v2849_v41 = vcombine.high %v585_v0, %v601_v3  ;;  %v2850_v13 = vcombine.high %v592_v2, %v608_v5 }
 0x3ac   :  { %v629_v35 = vcombine.low %v528_v33, %v536_v10  ;;  %v630_v14 = vcombine.high %v528_v33, %v536_v10  ;;  %1768 = vadd.xlane.f32.xlu0 %v1767_v39 }
 0x3ad   :  { %v960_v40 = vrot.slane %v953_v11, %v3294_v12  ;;  %v968_v38 = vrot.slane %v961_v37, %v3294_v12  ;;  %v1028_v15 = vrot.slane %v2849_v41, %v3294_v12  ;;  %v1036_v43 = vrot.slane %v2850_v13, %v3294_v12 }
 0x3ae   :  { %v637_v4 = vrot.slane %v629_v35, %v3294_v12  ;;  %v644_v18 = vrot.slane %v630_v14, %v3294_v12 }
 0x3af   :  { %v986_v7 = vcombine.high %v960_v40, %v968_v38  ;;  %v1053_v8 = vcombine.low %v1028_v15, %v1036_v43  ;;  %v1054_v19 = vcombine.high %v1028_v15, %v1036_v43  ;;  %v985_v48 = vcombine.low %v960_v40, %v968_v38 }
 0x3b0   :  { %v645_v57 = vcombine.low %v621_v42, %v637_v4  ;;  %v646_v20 = vcombine.high %v621_v42, %v637_v4  ;;  %v661_v21 = vcombine.low %v628_v17, %v644_v18  ;;  %v662_v22 = vcombine.high %v628_v17, %v644_v18 }
 0x3b1   :  { %v993_v53 = vrot.slane %v985_v48, %v3364_v1  ;;  %v1000_v55 = vrot.slane %v986_v7, %v3364_v1  ;;  %v1061_v62 = vrot.slane %v1053_v8, %v3364_v1  ;;  %v3572_v0 = vrot.slane %v1054_v19, %v3364_v1 }
 0x3b2   :  { %v653_v23 = vrot.slane %v645_v57, %v3364_v1  ;;  %v660_v25 = vrot.slane %v646_v20, %v3364_v1  ;;  %v669_v29 = vrot.slane %v661_v21, %v3364_v1  ;;  %v676_v30 = vrot.slane %v662_v22, %v3364_v1 }
 0x3b4   :  { %v969_v31 = vcombine.low %v653_v23, %v669_v29  ;;  %v977_v32 = vcombine.low %v660_v25, %v676_v30  ;;  %v2851_v45 = vcombine.high %v653_v23, %v669_v29  ;;  %v2852_v46 = vcombine.high %v660_v25, %v676_v30 }
 0x3b6   :  { %v976_v33 = vrot.slane %v969_v31, %v3294_v12  ;;  %v984_v34 = vrot.slane %v977_v32, %v3294_v12  ;;  %v1044_v26 = vrot.slane %v2851_v45, %v3294_v12  ;;  %v1052_v49 = vrot.slane %v2852_v46, %v3294_v12 }
 0x3b8   :  { %v1001_v27 = vcombine.low %v976_v33, %v984_v34  ;;  %v1002_v50 = vcombine.high %v976_v33, %v984_v34  ;;  %v1069_v51 = vcombine.low %v1044_v26, %v1052_v49  ;;  %v1070_v52 = vcombine.high %v1044_v26, %v1052_v49 }
 0x3ba   :  { %v1009_v56 = vrot.slane %v1001_v27, %v3364_v1  ;;  %v1016_v59 = vrot.slane %v1002_v50, %v3364_v1  ;;  %v1077_v60 = vrot.slane %v1069_v51, %v3364_v1  ;;  %v3568_v61 = vrot.slane %v1070_v52, %v3364_v1 }
 0x3bc   :  { %v1017_v2 = vcombine.low %v993_v53, %v1009_v56  ;;  %v1018_v3 = vcombine.high %v993_v53, %v1009_v56  ;;  %v1019_v5 = vcombine.low %v1000_v55, %v1016_v59  ;;  %v1020_v6 = vcombine.high %v1000_v55, %v1016_v59 }
 0x3bd   :  { %v1085_v9 = vcombine.low %v1061_v62, %v1077_v60  ;;  %v1086_v10 = vcombine.high %v1061_v62, %v1077_v60  ;;  %v1087_v11 = vcombine.low %v3572_v0, %v3568_v61  ;;  %v1088_v37 = vcombine.high %v3572_v0, %v3568_v61 }
 0x3be   :  { %2982 = vmatpush3.msra.mxu1 %v1017_v2  ;;  %2987 = vmatpush3.msra.mxu0 %v1018_v3 }
 0x3bf   :  { %2991 = vmatprep.subr.mxu1 %v3209_v44  ;;  %2996 = vmatprep.subr.mxu0 %v3209_v44 }
 0x424   :  { %v1748_v41 = vpop.xlane.xlu1 %1747 }
 0x425   :  { %3087 = vrcp.f32 %v1748_v41 }
 0x428   :  { %v1757_v13 = vpop.xlane.xlu0 %1756 }
 0x42c   :  { %v1751_v35 = vpop.xlane.xlu0 %1750  ;;  %v1754_v14 = vpop.xlane.xlu1 %1753 }
 0x42d   :  { %3089 = vrcp.f32 %v1751_v35 }
 0x42e   :  { %3091 = vrcp.f32 %v1754_v14 }
 0x42f   :  { %v3088_v39 = vpop.eup %3087  ;;  %3093 = vrcp.f32 %v1757_v13 }
 0x430   :  { %v1771_v40 = vmul.f32 %v3088_v39, %v3505_v16  ;;  %v1763_v38 = vpop.xlane.xlu1 %1762 }
 0x431   :  { %v1760_v15 = vpop.xlane.xlu0 %1759 }
 0x432   :  { %3095 = vrcp.f32 %v1760_v15  ;;  %2984 = vmatmul.mubr.msk.f32.vlgmr.msra.gmra.mrb[10].mxu1 %vm1089_vm2, %v1771_v40 }
 0x433   :  { %3097 = vrcp.f32 %v1763_v38  ;;  %2992 = vmatpush3.msra.mxu1 %v1019_v5  ;;  %2993 = vmatprep.mubr.msk.f32.mxu1 %vm3210_vm1, %v3209_v44 }
 0x434   :  { %3001 = vmatprep.subr.mxu1 %v3209_v44 }
 0x435   :  { %v1766_v43 = vpop.xlane.xlu0 %1765 }
 0x436   :  { %3099 = vrcp.f32 %v1766_v43 }
 0x437   :  { %v3090_v42 = vpop.eup %3089 }
 0x438   :  { %v3092_v17 = vpop.eup %3091  ;;  %v1773_v4 = vmul.f32 %v3090_v42, %v3514_v24 }
 0x439   :  { %v3094_v18 = vpop.eup %3093  ;;  %v1775_v16 = vmul.f32 %v3092_v17, %v3516_v28  ;;  %v1769_v7 = vpop.xlane.xlu0 %1768 }
 0x43a   :  { %2989 = vmatmul.mubr.msk.f32.vlgmr.msra.gmra.mrb[8].mxu0 %vm1089_vm2, %v1773_v4  ;;  %3101 = vrcp.f32 %v1769_v7  ;;  %v1777_v19 = vmul.f32 %v3094_v18, %v3510_v58 }
 0x43b   :  { %2994 = vmatmul.mubr.msk.f32.vlgmr.msra.gmra.mrb[12].mxu1 %vm1089_vm2, %v1775_v16  ;;  %2997 = vmatpush3.msra.mxu0 %v1020_v6 }
 0x43c   :  { %v3096_v8 = vpop.eup %3095  ;;  %3002 = vmatpush3.msra.mxu1 %v1085_v9  ;;  %2998 = vmatprep.mubr.msk.f32.mxu0 %vm3210_vm1, %v3209_v44 }
 0x43d   :  { %v3098_v57 = vpop.eup %3097  ;;  %v1779_v24 = vmul.f32 %v3096_v8, %v3524_v47  ;;  %3003 = vmatprep.mubr.msk.f32.mxu1 %vm3210_vm1, %v3209_v44  ;;  %3006 = vmatprep.subr.mxu0 %v3209_v44 }
 0x43e   :  { %3011 = vmatprep.subr.mxu1 %v3209_v44  ;;  %2999 = vmatmul.mubr.msk.f32.vlgmr.msra.gmra.mrb[10].mxu0 %vm1089_vm2, %v1777_v19  ;;  %v1781_v58 = vmul.f32 %v3098_v57, %v3522_v36 }
 0x43f   :  { %3004 = vmatmul.mubr.msk.f32.vlgmr.msra.gmra.mrb[14].mxu1 %vm1089_vm2, %v1779_v24  ;;  %3007 = vmatpush3.msra.mxu0 %v1086_v10 }
 0x440   :  { %3012 = vmatpush3.msra.mxu1 %v1087_v11  ;;  %3008 = vmatprep.mubr.msk.f32.mxu0 %vm3210_vm1, %v3209_v44  ;;  %v3100_v28 = vpop.eup %3099 }
 0x441   :  { %3013 = vmatprep.mubr.msk.f32.mxu1 %vm3210_vm1, %v3209_v44  ;;  %3016 = vmatprep.subr.mxu0 %v3209_v44  ;;  %v1783_v47 = vmul.f32 %v3100_v28, %v3534_v54 }
 0x442   :  { %3009 = vmatmul.mubr.msk.f32.vlgmr.msra.gmra.mrb[12].mxu0 %vm1089_vm2, %v1781_v58 }
 0x443   :  { %3017 = vmatpush3.msra.mxu0 %v1088_v37  ;;  %3018 = vmatprep.mubr.msk.f32.mxu0 %vm3210_vm1, %v3209_v44 }
 0x444   :  { %3014 = vmatmul.mubr.msk.f32.vlgmr.msra.gmra.mrb[16].mxu1 %vm1089_vm2, %v1783_v47  ;;  %v3102_v36 = vpop.eup %3101 }
 0x445   :  { %v1785_v20 = vmul.f32 %v3102_v36, %v3538_v63 }
 0x447   :  { %3019 = vmatmul.mubr.msk.f32.vlgmr.msra.gmra.mrb[14].mxu0 %vm1089_vm2, %v1785_v20 }
 0x505   :  { %v1855_v21 = vpop.f32.mrb[10].mxu1 }
 0x506   :  { %v2985_v22 = vpop.f32.mrb[11].mxu1 }
 0x50d   :  { %v1928_v23 = vpop.f32.mrb[8].mxu0 }
 0x50e   :  { %v2001_v25 = vpop.f32.mrb[12].mxu1  ;;  %v2990_v29 = vpop.f32.mrb[9].mxu0 }
 0x50f   :  { %v2370_v30 = vcombine.low %v1855_v21, %v2001_v25  ;;  %v2371_v54 = vcombine.high %v1855_v21, %v2001_v25  ;;  %v2995_v31 = vpop.f32.mrb[13].mxu1  ;;  %v2674_v29 = vld [vmem:[#allocation7] sm:$0xff] }
 0x511   :  { %v2074_v32 = vpop.f32.mrb[10].mxu0  ;;  %v2378_v26 = vrot.slane %v2370_v30, %v3294_v12  ;;  %v2385_v63 = vrot.slane %v2371_v54, %v3294_v12  ;;  %v2675_v30 = vld [vmem:[#allocation7 + $0x8] sm:$0xff] }
 0x512   :  { %v2386_v45 = vcombine.low %v1928_v23, %v2074_v32  ;;  %v2387_v46 = vcombine.high %v1928_v23, %v2074_v32  ;;  %v2147_v48 = vpop.f32.mrb[14].mxu1  ;;  %v3000_v33 = vpop.f32.mrb[11].mxu0 }
 0x513   :  { %v3005_v34 = vpop.f32.mrb[15].mxu1 }
 0x514   :  { %v2394_v49 = vrot.slane %v2386_v45, %v3294_v12  ;;  %v2401_v27 = vrot.slane %v2387_v46, %v3294_v12  ;;  %v3044_v45 = vpack.c.bf16 %v2675_v30, %v2674_v29 }
 0x515   :  { %v2220_v50 = vpop.f32.mrb[12].mxu0 }
 0x516   :  { %v2402_v51 = vcombine.low %v2378_v26, %v2394_v49  ;;  %v2403_v52 = vcombine.high %v2378_v26, %v2394_v49  ;;  %v2418_v53 = vcombine.low %v2385_v63, %v2401_v27  ;;  %v2419_v55 = vcombine.high %v2385_v63, %v2401_v27  ;;  %v3010_v56 = vpop.f32.mrb[13].mxu0  ;;  %3045 = vmatprep.subr.bf16.mxu1 %v3044_v45 }
 0x517   :  { %v2293_v59 = vpop.f32.mrb[16].mxu1  ;;  %3047 = vmatpush3.bf16.msra.mxu1 %v3044_v45 }
 0x518   :  { %v3015_v60 = vpop.f32.mrb[17].mxu1  ;;  %v2426_v61 = vrot.slane %v2418_v53, %v3364_v1  ;;  %v2438_v62 = vcombine.low %v2147_v48, %v2293_v59  ;;  %v2439_v0 = vcombine.high %v2147_v48, %v2293_v59  ;;  %v2410_v2 = vrot.slane %v2402_v51, %v3364_v1 }
 0x519   :  { %v2417_v3 = vrot.slane %v2403_v52, %v3364_v1  ;;  %v2433_v5 = vrot.slane %v2419_v55, %v3364_v1 }
 0x51a   :  { %v2366_v6 = vpop.f32.mrb[14].mxu0  ;;  %v2436_v37 = vcombine.high %v2426_v61, %v3209_v44  ;;  %v2446_v41 = vrot.slane %v2438_v62, %v3294_v12  ;;  %v2453_v13 = vrot.slane %v2439_v0, %v3294_v12  ;;  %v2434_v39 = vcombine.high %v2410_v2, %v3209_v44 }
 0x51b   :  { %v2454_v9 = vcombine.low %v2220_v50, %v2366_v6  ;;  %v2455_v10 = vcombine.high %v2220_v50, %v2366_v6  ;;  %v3020_v11 = vpop.f32.mrb[15].mxu0  ;;  %v2435_v40 = vcombine.high %v2417_v3, %v3209_v44  ;;  %v2437_v38 = vcombine.high %v2433_v5, %v3209_v44 }
 0x51c   :  { %v2574_v4 = vcombine.low %v2426_v61, %v2436_v37  ;;  %v2506_v57 = vcombine.low %v2410_v2, %v2434_v39  ;;  %v2676_v2 = vld [vmem:[#allocation7 + $0x10] sm:$0xff] }
 0x51d   :  { %v2462_v35 = vrot.slane %v2454_v9, %v3294_v12  ;;  %v2469_v14 = vrot.slane %v2455_v10, %v3294_v12  ;;  %v2590_v19 = vcombine.low %v2433_v5, %v2437_v38  ;;  %v2522_v24 = vcombine.low %v2417_v3, %v2435_v40  ;;  %v2677_v3 = vld [vmem:[#allocation7 + $0x18] sm:$0xff] }
 0x51e   :  { %v2581_v20 = vrot.slane %v2574_v4, %v3294_v12  ;;  %v2513_v31 = vrot.slane %v2506_v57, %v3294_v12 }
 0x51f   :  { %v2470_v15 = vcombine.low %v2446_v41, %v2462_v35  ;;  %v2471_v43 = vcombine.high %v2446_v41, %v2462_v35  ;;  %v2486_v42 = vcombine.low %v2453_v13, %v2469_v14  ;;  %v2487_v17 = vcombine.high %v2453_v13, %v2469_v14 }
 0x520   :  { %v2597_v54 = vrot.slane %v2590_v19, %v3294_v12  ;;  %v2529_v32 = vrot.slane %v2522_v24, %v3294_v12  ;;  %v3048_v35 = vpack.c.bf16 %v2677_v3, %v2676_v2 }
 0x521   :  { %v2478_v18 = vrot.slane %v2470_v15, %v3364_v1  ;;  %v2485_v16 = vrot.slane %v2471_v43, %v3364_v1  ;;  %v2494_v7 = vrot.slane %v2486_v42, %v3364_v1  ;;  %v2501_v8 = vrot.slane %v2487_v17, %v3364_v1 }
 0x522   :  { %3049 = vmatprep.subr.bf16.mxu1 %v3048_v35 }
 0x523   :  { %v2502_v58 = vcombine.high %v2478_v18, %v3209_v44  ;;  %v2503_v28 = vcombine.high %v2485_v16, %v3209_v44  ;;  %v2504_v47 = vcombine.high %v2494_v7, %v3209_v44  ;;  %v2505_v36 = vcombine.high %v2501_v8, %v3209_v44  ;;  %3051 = vmatpush3.bf16.msra.mxu1 %v3048_v35 }
 0x525   :  { %v2582_v21 = vcombine.low %v2494_v7, %v2504_v47  ;;  %v2598_v22 = vcombine.low %v2501_v8, %v2505_v36  ;;  %v2514_v23 = vcombine.low %v2478_v18, %v2502_v58  ;;  %v2530_v25 = vcombine.low %v2485_v16, %v2503_v28  ;;  %v2877_v7 = vld [vmem:[%s3690_s4] ss:$0 sm:$0xff]  ;;  %s3169_s4 = scalar_lea.vmem %s2826_s16, 256 }
 0x526   :  { %p3170_p10 = scmp.ne.s32.totalorder %s2826_s16, %s3169_s4  ;;  %p3175_p12 = scmp.lt.s32.totalorder %s3169_s4, %s3169_s4 }
 0x527   :  { %v2589_v46 = vrot.slane %v2582_v21, %v3294_v12  ;;  %v2605_v48 = vrot.slane %v2598_v22, %v3294_v12  ;;  %v2521_v44 = vrot.slane %v2514_v23, %v3294_v12  ;;  %v2537_v33 = vrot.slane %v2530_v25, %v3294_v12 }
 0x528   :  { %p3176_p13 = por %p3175_p12, %p3174_p11 }
 0x529   :  { %v2606_v34 = vcombine.low %v2581_v20, %v2589_v46  ;;  %v2622_v26 = vcombine.low %v2597_v54, %v2605_v48  ;;  %v2538_v63 = vcombine.low %v2513_v31, %v2521_v44  ;;  %v2554_v49 = vcombine.low %v2529_v32, %v2537_v33 }
 0x52a   :  { %v2539_v27 = vcombine.high %v2513_v31, %v2521_v44  ;;  %v2555_v50 = vcombine.high %v2529_v32, %v2537_v33  ;;  %v2607_v51 = vcombine.high %v2581_v20, %v2589_v46  ;;  %v2623_v52 = vcombine.high %v2597_v54, %v2605_v48  ;;  %p3177_p0 = pnand %p3176_p13, %p3170_p10 }
 0x52b   :  { %v2614_v53 = vrot.slane %v2606_v34, %v3364_v1  ;;  %v2630_v55 = vrot.slane %v2622_v26, %v3364_v1  ;;  %v2546_v56 = vrot.slane %v2538_v63, %v3364_v1  ;;  %v2562_v59 = vrot.slane %v2554_v49, %v3364_v1 }
 0x52c   :  { %v2553_v60 = vrot.slane %v2539_v27, %v3364_v1  ;;  %v2569_v61 = vrot.slane %v2555_v50, %v3364_v1  ;;  %v2621_v62 = vrot.slane %v2607_v51, %v3364_v1  ;;  %v2637_v0 = vrot.slane %v2623_v52, %v3364_v1 }
 0x52d   :  { %v2639_v5 = vcombine.high %v2614_v53, %v2630_v55  ;;  %v2638_v6 = vcombine.low %v2614_v53, %v2630_v55  ;;  %v2571_v9 = vcombine.high %v2546_v56, %v2562_v59  ;;  %v2570_v10 = vcombine.low %v2546_v56, %v2562_v59 }
 0x52e   :  { %v2573_v11 = vcombine.high %v2553_v60, %v2569_v61  ;;  %v2572_v37 = vcombine.low %v2553_v60, %v2569_v61  ;;  %v2640_v41 = vcombine.low %v2621_v62, %v2637_v0  ;;  %v2641_v13 = vcombine.high %v2621_v62, %v2637_v0 }
 0x52f   :  { %2646 = vrot.lane.b32.xlu0 %v2639_v5, %s3199_s29  ;;  %2644 = vrot.lane.b32.xlu1 %v2571_v9, %s3199_s29 }
 0x533   :  { %2660 = vrot.lane.b32.xlu0 %v2573_v11, %s3213_s12  ;;  %2652 = vrot.lane.b32.xlu1 %v2572_v37, %s3214_s13 }
 0x537   :  { %2654 = vrot.lane.b32.xlu1 %v2640_v41, %s3214_s13 }
 0x53b   :  { %2662 = vrot.lane.b32.xlu1 %v2641_v13, %s3213_s12 }
 0x5a1   :  { %v2647_v1 = vpop.permute.xlu0 %2646  ;;  %v2645_v14 = vpop.permute.xlu1 %2644 }
 0x5a2   :  { %v2666_v39 = vsel %vm1089_vm2, %v2570_v10, %v2645_v14  ;;  %v2667_v17 = vsel %vm1089_vm2, %v2638_v6, %v2647_v1 }
 0x5a5   :  { %v2661_v40 = vpop.permute.xlu0 %2660  ;;  %v2653_v38 = vpop.permute.xlu1 %2652 }
 0x5a6   :  { %v2669_v15 = vsel %vm2668_vm3, %v2666_v39, %v2653_v38 }
 0x5a7   :  { %v2672_v43 = vsel %vm2671_vm4, %v2669_v15, %v2661_v40 }
 0x5a8   :  { %3029 = vmatprep.mubr.msk.f32.mxu1 %vm2685_vm5, %v2672_v43 }
 0x5a9   :  { %v2655_v42 = vpop.permute.xlu1 %2654 }
 0x5aa   :  { %v2670_v4 = vsel %vm2668_vm3, %v2667_v17, %v2655_v42 }
 0x5ad   :  { %v2663_v18 = vpop.permute.xlu1 %2662 }
 0x5ae   :  { %v2673_v16 = vsel %vm2671_vm4, %v2670_v4, %v2663_v18 }
 0x5af   :  { %3030 = vmatmul.mubr.msk.f32.vlgmr.msra.gmra.mrb[18].mxu1 %vm2685_vm5, %v2673_v16 }
 0x682   :  { %v3031_v8 = vpop.f32.mrb[18].mxu1 }
 0x683   :  { %v2764_v19 = vadd.f32 %v3031_v8, %v2877_v7  ;;  %v2758_v57 = vpop.f32.mrb[19].mxu1 }
 0x684   :  { %v2759_v24 = vadd.f32 %v2877_v7, %v2758_v57 }
 0x685   :  { %v2786_v58 = vcombine.high %v2764_v19, %v2764_v19  ;;  %v2793_v28 = vrot.slane %v2764_v19, %v3294_v12 }
 0x686   :  { %v2769_v47 = vcombine.high %v2759_v24, %v2759_v24  ;;  %v2776_v36 = vrot.slane %v2759_v24, %v3294_v12 }
 0x687   :  { %v2800_v20 = vrot.slane %v2786_v58, %v3294_v12  ;;  %v2801_v21 = vcombine.high %v2793_v28, %v2793_v28  ;;  %2816 = vst.msk [vmem:[#allocation8 + $0x8] sm:$0x3] %vm2811_vm6, %v2793_v28 }
 0x688   :  { %v2783_v22 = vrot.slane %v2769_v47, %v3294_v12  ;;  %v2784_v23 = vcombine.high %v2776_v36, %v2776_v36  ;;  %2812 = vst.msk [vmem:[#allocation8] sm:$0x3] %vm2811_vm6, %v2776_v36 }
 0x689   :  { %v2802_v25 = vcombine.high %v2800_v20, %v2800_v20  ;;  %2817 = vst.msk [vmem:[#allocation8 + $0xa] sm:$0x3] %vm2811_vm6, %v2801_v21  ;;  %2818 = vst.msk [vmem:[#allocation8 + $0xc] sm:$0x3] %vm2811_vm6, %v2800_v20 }
 0x68a   :  { %v2785_v29 = vcombine.high %v2783_v22, %v2783_v22  ;;  %2813 = vst.msk [vmem:[#allocation8 + $0x2] sm:$0x3] %vm2811_vm6, %v2784_v23  ;;  %2814 = vst.msk [vmem:[#allocation8 + $0x4] sm:$0x3] %vm2811_vm6, %v2783_v22 }
 0x68b   :  { %2819 = vst.msk [vmem:[#allocation8 + $0xe] sm:$0x3] %vm2811_vm6, %v2802_v25 }
 0x68c   :  { %2815 = vst.msk [vmem:[#allocation8 + $0x6] sm:$0x3] %vm2811_vm6, %v2785_v29 }
 0x68d   :  { %3180 = shalt.err (!%p3177_p0)
}
 0x68e   :  { %s3181_s20 = scalar_lea.hbm %s3691_s5, 256 }
 0x68f   :  { %p3182_p1 = scmp.ne.s32.totalorder %s3691_s5, %s3181_s20  ;;  %p3185_p2 = scmp.lt.u32.totalorder %s3181_s20, %s3691_s5 }
 0x691   :  { %p3187_p3 = pnand %p3185_p2, %p3182_p1 }
 0x693   :  { %3190 = shalt.err (!%p3187_p3)
}
 0x694   :  { %2831 = dma.vmem_to_hbm [thread:$0]  %s2826_s16, 256, %s3691_s5, [#allocation4], %s3201_s1, %s3201_s1, %s3202_s17  }
 0x695   :  { %3195 = dma.done.wait [#allocation4], 256  }
 0x696   :  { %3196 = vsyncadd [#allocation4], 4294967040 }
 0x697   :  { %2835 = vsyncpa [#allocation3], 1 }
 0x698   :  { %2836 = vsyncpa [#allocation6], 1 }
 0x699   :  { %2837 = vsyncpa [#allocation4], 1 }

</bundles_post_ra>
